<compile_context>
chip_gen: v6e
topology: v6e:2x2x1
jax: 0.10.0
libtpu: 0.0.40
codegen_flags: <defaults>
</compile_context>

<pallas_src>
import jax
import jax.numpy as jnp
from jax.experimental import pallas as pl
from jax.experimental.pallas import tpu as pltpu


def _make_entropy_kernel(H, TH, mask_rows):
    def kernel(x_ref, o_ref):
        ht = pl.program_id(1)

        @pl.when(ht == 0)
        def _():
            o_ref[...] = jnp.zeros_like(o_ref)

        x = x_ref[...].astype(jnp.float32)              # (C, TH, W)
        m = jnp.max(x, axis=0, keepdims=True)           # (1, TH, W)  VPU slab max over C
        xm = x - m
        e = jnp.exp(xm)                                  # EUP
        s = jnp.sum(e, axis=0)                           # (TH, W)
        t = jnp.sum(e * xm, axis=0)                      # (TH, W)
        # sum_c p*logp for each spatial position:
        r = t / s - jnp.log(s)                           # (TH, W)
        if mask_rows:
            row = ht * TH + jax.lax.broadcasted_iota(jnp.int32, r.shape, 0)
            r = jnp.where(row < H, r, 0.0)
        o_ref[...] += r                                  # per-batch partial sums (resident)

    return kernel


def entropy(x, *, target_block_bytes=4 << 20, max_block_bytes=8 << 20):
    """-(softmax(x, axis=1) * log_softmax(x, axis=1)).sum()  as a scalar f32."""
    x = jnp.asarray(x)
    if x.ndim < 2:
        raise ValueError("entropy expects at least 2 dims (softmax over dim 1)")
    B, C = x.shape[0], x.shape[1]

    # View with channels kept on a leading axis. These reshapes only merge /
    # add trailing contiguous dims, so they are metadata-only (no HBM copy).
    if x.ndim == 2:
        x4 = x.reshape(B, C, 1, 1)
    elif x.ndim == 3:
        x4 = x.reshape(B, C, 1, x.shape[2])
    elif x.ndim == 4:
        x4 = x
    else:
        x4 = x.reshape(B, C, -1, x.shape[-1])
    _, _, H, W = x4.shape

    # Tile height: whole H if it fits comfortably, else the largest
    # multiple-of-8 tile near the target block size.
    row_bytes = C * W * x4.dtype.itemsize
    if H * row_bytes <= max_block_bytes:
        TH = H
    else:
        TH = int(max(8, min(H, (target_block_bytes // row_bytes) // 8 * 8)))
    n_h = pl.cdiv(H, TH)
    mask_rows = (H % TH) != 0

    kernel = _make_entropy_kernel(H, TH, mask_rows)

    out = pl.pallas_call(
        kernel,
        out_shape=jax.ShapeDtypeStruct((B, TH, W), jnp.float32),
        grid_spec=pltpu.PrefetchScalarGridSpec(
            num_scalar_prefetch=0,
            grid=(B, n_h),
            in_specs=[pl.BlockSpec((None, C, TH, W), lambda b, h: (b, 0, h, 0))],
            out_specs=pl.BlockSpec((None, TH, W), lambda b, h: (b, 0, 0)),
        ),
        compiler_params=pltpu.CompilerParams(
            dimension_semantics=("parallel", "arbitrary"),
            vmem_limit_bytes=32 * 1024 * 1024,
        ),
    )(x4)

    # Single small reduction over the per-batch partial maps, then negate.
    return -jnp.sum(out)


if __name__ == "__main__":
    key = jax.random.PRNGKey(0)
    x = jax.random.normal(key, (2, 4, 16, 16), dtype=jnp.float32)  # NCHW

    result = jax.block_until_ready(entropy(x))

    # Pure-JAX reference check.
    p = jax.nn.softmax(x, axis=1)
    lp = jax.nn.log_softmax(x, axis=1)
    ref = -jnp.sum(p * lp)
    assert jnp.allclose(result, ref, rtol=1e-5, atol=1e-5), (result, ref)

    print("KERNEL_OK")
</pallas_src>

<mosaic_0001>
module attributes {stable_mosaic.version = 11 : i64} {
  func.func @kernel(%arg0: i32, %arg1: i32, %arg2: memref<1x4x16x16xf32, #tpu.memory_space<vmem>>, %arg3: memref<1x16x16xf32, #tpu.memory_space<vmem>>) attributes {dimension_semantics = [#tpu.dimension_semantics<parallel>, #tpu.dimension_semantics<arbitrary>], iteration_bounds = array<i64: 2, 1>, scalar_prefetch = 0 : i64, scratch_operands = 0 : i64, tpu.core_type = #tpu.core_type<tc>, window_params = [{transform_indices = @transform_0, window_bounds = array<i64: 1, 4, 16, 16>}, {transform_indices = @transform_1, window_bounds = array<i64: 1, 16, 16>}]} {
    %c0_i32 = arith.constant 0 : i32
    %0 = arith.cmpi eq, %arg1, %c0_i32 : i32
    %1 = arith.extui %0 : i1 to i32
    %c0_i32_0 = arith.constant 0 : i32
    %2 = arith.cmpi ne, %1, %c0_i32_0 : i32
    scf.if %2 {
      %cst_12 = arith.constant 0.000000e+00 : f32
      %22 = vector.broadcast %cst_12 : f32 to vector<16x16xf32>
      %c0_13 = arith.constant 0 : index
      %c0_14 = arith.constant 0 : index
      %c0_15 = arith.constant 0 : index
      %23 = vector.load %arg3[%c0_13, %c0_14, %c0_15] : memref<1x16x16xf32, #tpu.memory_space<vmem>>, vector<1x16x16xf32>
      %24 = vector.shape_cast %23 : vector<1x16x16xf32> to vector<16x16xf32>
      %25 = vector.shape_cast %22 : vector<16x16xf32> to vector<1x16x16xf32>
      tpu.vector_store %arg3[%c0_13, %c0_14, %c0_15], %25 {strides = array<i32>} : memref<1x16x16xf32, #tpu.memory_space<vmem>>, vector<1x16x16xf32>,
    } else {
    }
    %c0 = arith.constant 0 : index
    %c0_1 = arith.constant 0 : index
    %c0_2 = arith.constant 0 : index
    %c0_3 = arith.constant 0 : index
    %3 = vector.load %arg2[%c0, %c0_1, %c0_2, %c0_3] : memref<1x4x16x16xf32, #tpu.memory_space<vmem>>, vector<1x4x16x16xf32>
    %4 = vector.shape_cast %3 : vector<1x4x16x16xf32> to vector<4x16x16xf32>
    %cst = arith.constant dense<0xFF800000> : vector<16x16xf32>
    %5 = vector.multi_reduction <maximumf>, %4, %cst [0] : vector<4x16x16xf32> to vector<16x16xf32>
    %6 = vector.shape_cast %5 : vector<16x16xf32> to vector<1x16x16xf32>
    %7 = vector.broadcast %6 : vector<1x16x16xf32> to vector<4x16x16xf32>
    %8 = arith.subf %4, %7 : vector<4x16x16xf32>
    %9 = math.exp %8 : vector<4x16x16xf32>
    %cst_4 = arith.constant dense<0.000000e+00> : vector<16x16xf32>
    %10 = vector.multi_reduction <add>, %9, %cst_4 [0] : vector<4x16x16xf32> to vector<16x16xf32>
    %11 = arith.mulf %9, %8 : vector<4x16x16xf32>
    %cst_5 = arith.constant dense<0.000000e+00> : vector<16x16xf32>
    %12 = vector.multi_reduction <add>, %11, %cst_5 [0] : vector<4x16x16xf32> to vector<16x16xf32>
    %13 = arith.divf %12, %10 : vector<16x16xf32>
    %14 = math.log %10 : vector<16x16xf32>
    %15 = arith.subf %13, %14 : vector<16x16xf32>
    %c0_6 = arith.constant 0 : index
    %c0_7 = arith.constant 0 : index
    %c0_8 = arith.constant 0 : index
    %16 = vector.load %arg3[%c0_6, %c0_7, %c0_8] : memref<1x16x16xf32, #tpu.memory_space<vmem>>, vector<1x16x16xf32>
    %17 = vector.shape_cast %16 : vector<1x16x16xf32> to vector<16x16xf32>
    %18 = arith.addf %17, %15 : vector<16x16xf32>
    %c0_9 = arith.constant 0 : index
    %c0_10 = arith.constant 0 : index
    %c0_11 = arith.constant 0 : index
    %19 = vector.load %arg3[%c0_9, %c0_10, %c0_11] : memref<1x16x16xf32, #tpu.memory_space<vmem>>, vector<1x16x16xf32>
    %20 = vector.shape_cast %19 : vector<1x16x16xf32> to vector<16x16xf32>
    %21 = vector.shape_cast %18 : vector<16x16xf32> to vector<1x16x16xf32>
    tpu.vector_store %arg3[%c0_9, %c0_10, %c0_11], %21 {strides = array<i32>} : memref<1x16x16xf32, #tpu.memory_space<vmem>>, vector<1x16x16xf32>,
    return
  }
  func.func @transform_0(%arg0: i32, %arg1: i32) -> (i32, i32, i32, i32) {
    %c0_i32 = arith.constant 0 : i32
    %c0_i32_0 = arith.constant 0 : i32
    %c0_i32_1 = arith.constant 0 : i32
    return %arg0, %c0_i32, %arg1, %c0_i32_0 : i32, i32, i32, i32
  }
  func.func @transform_1(%arg0: i32, %arg1: i32) -> (i32, i32, i32) {
    %c0_i32 = arith.constant 0 : i32
    %c0_i32_0 = arith.constant 0 : i32
    %c0_i32_1 = arith.constant 0 : i32
    return %arg0, %c0_i32, %c0_i32_0 : i32, i32, i32
  }
}

</mosaic_0001>

<bundles_post_ra>
// kernel: tpu_custom_call.1
= control target key start
LH: loop header
LB: loop body
LE: loop exit
PB: predicated region body
PF: predicated region fallthrough
CT: control target
= control target key end

     0   :  { %6 = vsyncpa [#allocation3], 0  ;;  %s775_s0 = inlined_call_operand.hbm [shape: f32[2,4,16,16], index: 0, kind: input, shape index: {}]   ;;  %s776_s1 = inlined_call_operand.hbm [shape: f32[2,16,16], index: 1, kind: output, shape index: {}]  }
   0x1   :  { %8 = vsyncpa [#allocation3 + $0x1], 0 }
   0x2   :  { %9 = vsyncpa [#allocation4], 0 }
   0x3   :  { %11 = vsyncpa [#allocation4 + $0x1], 0  ;;  %s591_s6 = smov 0   ;;  %s593_s7 = smov 0  }
   0x4   :  { %s595_s8 = smov 0   ;;  %s597_s9 = smov 0  }
   0x5   :  { %s599_s10 = smov 0   ;;  %s601_s11 = smov 0  }
   0x6 LB: > { %s356_s12 = sadd.s32 4294967295, %s572_s11   ;;  %s357_s13 = sadd.s32 4294967294, %s572_s11   ;;  %s572_s11 = sphi %s601_s11, %s17_s11   ;;  %s568_s10 = sphi %s599_s10, %s787_s10   ;;  %s564_s9 = sphi %s597_s9, %s786_s9   ;;  %s560_s8 = sphi %s595_s8, %s785_s8   ;;  %s556_s7 = sphi %s593_s7, %s784_s7   ;;  %s552_s6 = sphi %s591_s6, %s783_s6  }
   0x7   : > { %s29_s14 = sadd.s32 1, %s568_s10  ;;  %s38_s15 = sadd.s32 1, %s560_s8 }
   0x8   : > { %p31_p0 = scmp.ge.s32.totalorder %s29_s14, 2  ;;  %p45_p1 = scmp.ne.s32.totalorder %s560_s8, %s556_s7 }
   0x9   : > { %p46_p2 = scmp.eq.s32.totalorder %s572_s11, 0  ;;  %p51_p3 = scmp.ne.s32.totalorder %s556_s7, %s552_s6 }
   0xa   : > { %s789_s14 = smov (%p31_p0, %s29_s14), 0  ;;  %p52_p5 = scmp.eq.s32.totalorder %s356_s12, 0 }
   0xb   : > { %p632_p4 = por %p46_p2, %p45_p1  ;;  %s33_s17 = ssub.s32 %s568_s10, %s789_s14 }
   0xc   : > { %p75_p6 = scmp.eq.s32.totalorder %s356_s12, 1  ;;  %p36_p7 = scmp.eq.s32.totalorder %s33_s17, 0 }
   0xd   : > { %p638_p8 = por %p52_p5, %p51_p3  ;;  %p81_p10 = scmp.eq.s32.totalorder %s357_s13, 1 }
   0xe   : > { %p642_p9 = por %p75_p6, %p45_p1  ;;  %p385_p13 = scmp.lt.s32.totalorder %s572_s11, 2 }
   0xf   : > { %s647_s20 = scalar_select %p36_p7, %s560_s8, %s38_s15  }
  0x10   : > { %p649_p11 = por %p81_p10, %p51_p3  ;;  %s101_s22 = sand.u32 1, %s560_s8  }
  0x11   : > { %s360_s23 = sshll.u32 %s101_s22, 6  ;;  %s371_s24 = sshll.u32 %s568_s10, 10 }
  0x12   : > { %s113_s27 = scalar_lea.hbm %s775_s0, %s371_s24  ;;  %s105_s28 = scalar_lea.vmem [#allocation2], %s360_s23 }
  0x13   : > { %s114_s29 = sshll.u32 %s105_s28, 4  ;;  %p662_p0 = pnand %p385_p13, %p632_p4  ;;  %s115_s29 = int_to_ptr.vmem [resolvable:$true] %s114_s29 }
  0x14   : > { %p363_p1 = scmp.ge.s32.totalorder %s572_s11, 1  ;;  %s102_s2 = scalar_lea.sflag [#allocation3], %s101_s22 }
  0x15   : > { %p466_p2 = pneg %p662_p0  ;;  %s477_s3 = scalar_lea.vmem %s115_s29, 1024 }
  0x16   : > { %p478_p3 = scmp.ne.s32.totalorder %s115_s29, %s477_s3  ;;  %s574_s4 = smov [#allocation2]  }
  0x17   : > { %s482_s5 = sshll.u32 %s574_s4, 4  ;;  %s483_s5 = int_to_ptr.vmem [resolvable:$false] %s482_s5 }
  0x18   : > { %p480_p5 = pnand %p478_p3, %p466_p2  ;;  %s484_s12 = scalar_lea.vmem %s483_s5, 2048 }
  0x19   : > { %p485_p7 = scmp.lt.s32.totalorder %s115_s29, %s483_s5  ;;  %p486_p10 = scmp.lt.s32.totalorder %s484_s12, %s477_s3 }
  0x1a   : > { %p481_p6 = pneg %p480_p5 }
  0x1b   : > { %p487_p12 = por %p486_p10, %p485_p7 }
  0x1d   : > { %p488_p4 = pnand %p487_p12, %p481_p6 }
  0x1f   : > { %491 = shalt.err (!%p488_p4)
}
  0x20   : > { %s575_s13 = smov 128   ;;  %s576_s15 = smov 8  }
  0x21   : > { %380 = dma.hbm_to_vmem [thread:$0]  (!%p662_p0), %s113_s27, 1024, %s115_s29, %s102_s2, %s575_s13, %s575_s13, %s576_s15  }
  0x22   : > { %p122_p13 = scmp.lt.s32.totalorder %s572_s11, 3 }
  0x24   : > { %p123_p2 = pnand %p363_p1, %p122_p13 }
  0x25   : > { %s675_s16 = sand.u32 (!%p123_p2), 1, %s556_s7  }
  0x26   : > { %126 = sbr.rel (%p123_p2) target bundleno = 116 (0x74), region = 24  ;;  %s364_s17 = sshll.u32 (!%p123_p2), %s675_s16, 6 }
  0x27   : > { %s129_s22 = scalar_lea.sflag (!%p123_p2), [#allocation3], %s675_s16  ;;  %s132_s23 = scalar_lea.vmem (!%p123_p2), [#allocation2], %s364_s17 }
  0x2b   : > { %543 = dma.done.wait (%p638_p8), %s129_s22, 1024  }
  0x2c   : > { %545 = vsyncadd (%p638_p8), %s129_s22, 4294966272  ;;  %s365_s24 = sshll.u32 %s675_s16, 4  ;;  %vm156_vm0 = vcmask 130048   ;;  %v577_v0 = vmov 0.0   ;;  %v159_v1 = vld [vmem:[%s132_s23] sm:$0xff]  ;;  %v161_v2 = vld [vmem:[%s132_s23 + $0x10] sm:$0xff] }
  0x2d   : > { %s684_s25 = scalar_lea.vmem [#allocation5], %s365_s24  ;;  %v163_v3 = vld [vmem:[%s132_s23 + $0x20] sm:$0xff]  ;;  %v165_v4 = vld [vmem:[%s132_s23 + $0x30] sm:$0xff]  ;;  %v168_v5 = vsel %vm156_vm0, %v159_v1, -inf  ;;  %v169_v6 = vsel %vm156_vm0, %v161_v2, -inf  ;;  %v160_v8 = vld [vmem:[%s132_s23 + $0x8] sm:$0xff] }
  0x2e   : > { %157 = vst.msk [vmem:[%s684_s25] sm:$0xff] %vm156_vm0, %v577_v0  ;;  %158 = vst.msk [vmem:[%s684_s25 + $0x8] sm:$0xff] %vm156_vm0, %v577_v0  ;;  %v170_v7 = vsel %vm156_vm0, %v163_v3, -inf  ;;  %v162_v9 = vld [vmem:[%s132_s23 + $0x18] sm:$0xff]  ;;  %v172_v11 = vsel %vm156_vm0, %v165_v4, -inf  ;;  %v164_v12 = vld [vmem:[%s132_s23 + $0x28] sm:$0xff] }
  0x2f   : > { %v171_v10 = vmax.f32 %v168_v5, %v170_v7  ;;  %v166_v13 = vld [vmem:[%s132_s23 + $0x38] sm:$0xff]  ;;  %v175_v14 = vsel %vm156_vm0, %v160_v8, -inf  ;;  %v176_v15 = vsel %vm156_vm0, %v162_v9, -inf  ;;  %v173_v16 = vmax.f32 %v169_v6, %v172_v11  ;;  %s372_s18 = sshll.u32 %s564_s9, 8  ;;  %s272_s26 = sshll.u32 %s684_s25, 4  ;;  %s725_s26 = int_to_ptr.vmem [resolvable:$true] %s272_s26 }
  0x30   : > { %v177_v17 = vsel %vm156_vm0, %v164_v12, -inf  ;;  %v179_v18 = vsel %vm156_vm0, %v166_v13, -inf  ;;  %s723_s29 = scalar_lea.hbm %s776_s1, %s372_s18  ;;  %s259_s30 = scalar_lea.sflag [#allocation4], %s675_s16 }
  0x31   : > { %v178_v19 = vmax.f32 %v175_v14, %v177_v17  ;;  %v180_v20 = vmax.f32 %v176_v15, %v179_v18  ;;  %v174_v21 = vmax.f32 %v171_v10, %v173_v16  ;;  %s492_s9 = scalar_lea.vmem %s725_s26, 256  ;;  %s578_s2 = smov [#allocation5]  }
  0x32   : > { %p493_p8 = scmp.ne.s32.totalorder %s725_s26, %s492_s9  ;;  %s496_s3 = sshll.u32 %s578_s2, 4  ;;  %s497_s3 = int_to_ptr.vmem [resolvable:$false] %s496_s3 }
  0x33   : > { %v181_v22 = vmax.f32 %v178_v19, %v180_v20  ;;  %v182_v23 = vsub.f32 %v159_v1, %v174_v21  ;;  %v184_v24 = vsub.f32 %v161_v2, %v174_v21  ;;  %v186_v25 = vsub.f32 %v163_v3, %v174_v21  ;;  %s498_s4 = scalar_lea.vmem %s497_s3, 512  ;;  %p499_p1 = scmp.lt.s32.totalorder %s725_s26, %s497_s3 }
  0x34   : > { %v188_v26 = vsub.f32 %v165_v4, %v174_v21  ;;  %p494_p12 = pnand %p493_p8, %p642_p9  ;;  %p500_p3 = scmp.lt.s32.totalorder %s498_s4, %s492_s9 }
  0x35   : > { %v183_v27 = vsub.f32 %v160_v8, %v181_v22  ;;  %v185_v28 = vsub.f32 %v162_v9, %v181_v22  ;;  %v190_v29 = vmul.f32 1.442695, %v182_v23  ;;  %v194_v30 = vmul.f32 1.442695, %v184_v24 }
  0x36   : > { %v198_v31 = vmul.f32 1.442695, %v186_v25  ;;  %v187_v32 = vsub.f32 %v164_v12, %v181_v22  ;;  %v202_v33 = vmul.f32 1.442695, %v188_v26  ;;  %v189_v34 = vsub.f32 %v166_v13, %v181_v22  ;;  %p495_p0 = pneg %p494_p12  ;;  %p501_p5 = por %p500_p3, %p499_p1 }
  0x37   : > { %440 = vpow2.f32 %v190_v29  ;;  %v192_v35 = vmul.f32 1.442695, %v183_v27  ;;  %v196_v36 = vmul.f32 1.442695, %v185_v28 }
  0x38   : > { %442 = vpow2.f32 %v194_v30  ;;  %v200_v37 = vmul.f32 1.442695, %v187_v32  ;;  %v204_v38 = vmul.f32 1.442695, %v189_v34  ;;  %v253_v30 = vld [vmem:[%s684_s25 + $0x8] sm:$0xff]  ;;  %p502_p6 = pnand %p501_p5, %p495_p0 }
  0x39   : > { %444 = vpow2.f32 %v198_v31 }
  0x3a   : > { %446 = vpow2.f32 %v202_v33 }
  0x3b   : > { %448 = vpow2.f32 %v192_v35 }
  0x3c   : > { %450 = vpow2.f32 %v196_v36 }
  0x3d   : > { %452 = vpow2.f32 %v200_v37 }
  0x3e   : > { %454 = vpow2.f32 %v204_v38 }
  0x44   : > { %v441_v39 = vpop.eup %440 }
  0x45   : > { %v443_v40 = vpop.eup %442  ;;  %v206_v41 = vsel %vm156_vm0, %v441_v39, 0.0  ;;  %v220_v47 = vmul.f32 %v441_v39, %v182_v23  ;;  %v252_v23 = vld [vmem:[%s684_s25] sm:$0xff] }
  0x46   : > { %v445_v42 = vpop.eup %444  ;;  %v207_v43 = vsel %vm156_vm0, %v443_v40, 0.0  ;;  %v222_v50 = vmul.f32 %v443_v40, %v184_v24 }
  0x47   : > { %v447_v44 = vpop.eup %446  ;;  %v208_v45 = vadd.f32 %v207_v43, %v206_v41  ;;  %v209_v46 = vsel %vm156_vm0, %v445_v42, 0.0  ;;  %v224_v55 = vmul.f32 %v445_v42, %v186_v25  ;;  %v228_v59 = vsel %vm156_vm0, %v220_v47, 0.0 }
  0x48   : > { %v449_v48 = vpop.eup %448  ;;  %v211_v49 = vsel %vm156_vm0, %v447_v44, 0.0  ;;  %v229_v62 = vsel %vm156_vm0, %v222_v50, 0.0  ;;  %v226_v3 = vmul.f32 %v447_v44, %v188_v26 }
  0x49   : > { %v451_v51 = vpop.eup %450  ;;  %v210_v52 = vadd.f32 %v209_v46, %v208_v45  ;;  %v213_v53 = vsel %vm156_vm0, %v449_v48, 0.0  ;;  %v221_v0 = vmul.f32 %v449_v48, %v183_v27  ;;  %v230_v4 = vadd.f32 %v229_v62, %v228_v59 }
  0x4a   : > { %v453_v54 = vpop.eup %452  ;;  %v214_v56 = vsel %vm156_vm0, %v451_v51, 0.0  ;;  %v223_v1 = vmul.f32 %v451_v51, %v185_v28  ;;  %v231_v6 = vsel %vm156_vm0, %v224_v55, 0.0  ;;  %v233_v12 = vsel %vm156_vm0, %v226_v3, 0.0 }
  0x4b   : > { %v455_v57 = vpop.eup %454  ;;  %v212_v58 = vadd.f32 %v211_v49, %v210_v52  ;;  %v215_v60 = vadd.f32 %v214_v56, %v213_v53  ;;  %v216_v61 = vsel %vm156_vm0, %v453_v54, 0.0  ;;  %v225_v7 = vmul.f32 %v453_v54, %v187_v32 }
  0x4c   : > { %v218_v63 = vsel %vm156_vm0, %v455_v57, 0.0  ;;  %v235_v8 = vsel %vm156_vm0, %v221_v0, 0.0  ;;  %v236_v9 = vsel %vm156_vm0, %v223_v1, 0.0  ;;  %v232_v10 = vadd.f32 %v231_v6, %v230_v4 }
  0x4d   : > { %456 = vrcp.f32 %v212_v58  ;;  %v217_v2 = vadd.f32 %v216_v61, %v215_v60  ;;  %v237_v11 = vadd.f32 %v236_v9, %v235_v8  ;;  %v227_v13 = vmul.f32 %v455_v57, %v189_v34 }
  0x4e   : > { %458 = vlog2.f32 %v212_v58  ;;  %v238_v14 = vsel %vm156_vm0, %v225_v7, 0.0  ;;  %v234_v15 = vadd.f32 %v233_v12, %v232_v10 }
  0x4f   : > { %v219_v5 = vadd.f32 %v218_v63, %v217_v2  ;;  %v239_v16 = vadd.f32 %v238_v14, %v237_v11  ;;  %v240_v17 = vsel %vm156_vm0, %v227_v13, 0.0 }
  0x51   : > { %460 = vrcp.f32 %v219_v5  ;;  %v241_v21 = vadd.f32 %v240_v17, %v239_v16 }
  0x52   : > { %462 = vlog2.f32 %v219_v5 }
  0x5a   : > { %v457_v18 = vpop.eup %456 }
  0x5b   : > { %v459_v19 = vpop.eup %458  ;;  %v243_v20 = vmul.f32 %v457_v18, %v234_v15 }
  0x5c   : > { %v247_v22 = vmul.f32 0.6931472, %v459_v19 }
  0x5e   : > { %v461_v24 = vpop.eup %460  ;;  %v250_v25 = vsub.f32 %v243_v20, %v247_v22 }
  0x5f   : > { %v463_v26 = vpop.eup %462  ;;  %v245_v27 = vmul.f32 %v461_v24, %v241_v21 }
  0x60   : > { %v254_v28 = vadd.f32 %v252_v23, %v250_v25  ;;  %v249_v29 = vmul.f32 0.6931472, %v463_v26 }
  0x62   : > { %256 = vst.msk [vmem:[%s684_s25] sm:$0xff] %vm156_vm0, %v254_v28  ;;  %v251_v31 = vsub.f32 %v245_v27, %v249_v29 }
  0x64   : > { %v255_v32 = vadd.f32 %v253_v30, %v251_v31 }
  0x66   : > { %257 = vst.msk [vmem:[%s684_s25 + $0x8] sm:$0xff] %vm156_vm0, %v255_v32 }
  0x67   : > { %505 = shalt.err (!%p502_p6)
}
  0x68   : > { %s506_s5 = scalar_lea.hbm %s723_s29, 256  ;;  %s510_s15 = scalar_lea.hbm %s776_s1, 512 }
  0x69   : > { %p507_p7 = scmp.ne.s32.totalorder %s723_s29, %s506_s5  ;;  %p511_p13 = scmp.lt.s32.totalorder %s723_s29, %s776_s1 }
  0x6a   : > { %p512_p2 = scmp.lt.s32.totalorder %s510_s15, %s506_s5 }
  0x6b   : > { %p508_p10 = pnand %p507_p7, %p642_p9 }
  0x6c   : > { %p513_p8 = por %p512_p2, %p511_p13 }
  0x6d   : > { %p509_p4 = pneg %p508_p10 }
  0x6f   : > { %p514_p12 = pnand %p513_p8, %p509_p4 }
  0x71   : > { %517 = shalt.err (!%p514_p12)
}
  0x72   : > { %s579_s23 = smov 128   ;;  %s580_s24 = smov 8  }
  0x73   : > { %375 = dma.vmem_to_hbm [thread:$0]  (%p642_p9), %s725_s26, 256, %s723_s29, %s259_s30, %s579_s23, %s579_s23, %s580_s24  }
  0x74 PF: > { %s287_s25 = sand.u32 1, %s552_s6   ;;  %p782_p0 = scmp.ge.s32.totalorder %s572_s11, 2 }
  0x75   : > { %s288_s18 = scalar_lea.sflag [#allocation4], %s287_s25 }
  0x76   : > { %p382_p1 = pnand %p782_p0, %p649_p11 }
  0x78   : > { %p383_p3 = pneg %p382_p1 }
  0x7a   : > { %547 = dma.done.wait (%p383_p3), %s288_s18, 256  }
  0x7b   : > { %549 = vsyncadd (%p383_p3), %s288_s18, 4294967040  ;;  %s17_s11 = sadd.s32 1, %s572_s11   ;;  %s783_s6 = smov %s556_s7 }
  0x7c   : > { %p14_p5 = scmp.ge.s32.totalorder %s17_s11, 4   ;;  %s784_s7 = smov %s560_s8 }
  0x7d   : > { %s785_s8 = smov %s647_s20  ;;  %s786_s9 = smov %s568_s10 }
  0x7e   : > { %s787_s10 = smov %s789_s14  ;;  %16 = sbr.rel (!%p14_p5) target bundleno = 6 (0x6), region = 73 }
  0x83   :  { %293 = vsyncpa [#allocation3], 1 }
  0x84   :  { %295 = vsyncpa [#allocation3 + $0x1], 1 }
  0x85   :  { %296 = vsyncpa [#allocation4], 1 }
  0x86   :  { %298 = vsyncpa [#allocation4 + $0x1], 1 }

</bundles_post_ra>
